<compile_context>
chip_gen: v7x
topology: tpu7x:2x2x1
jax: 0.10.0
libtpu: 0.0.40
codegen_flags: <defaults>
</compile_context>

<pallas_src>
import math
import functools

import jax
import jax.numpy as jnp
from jax.experimental import pallas as pl
from jax.experimental.pallas import tpu as pltpu


_LANE = 128        # lane width; class-dim padding target for lane-dense stores
_TILE_CAP = 4096   # max rows per x tile (kept a multiple of the sublane count)


def _round_up(x, m):
    return (x + m - 1) // m * m


def _vmem_budget():
    """Generation-aware VMEM sizing: (planning budget, vmem_limit_bytes)."""
    try:
        cap = pltpu.get_tpu_info().vmem_capacity_bytes
    except Exception:
        cap = 64 * 1024 * 1024  # assume v7x (most restrictive) if query fails
    budget = max(24 * 1024 * 1024, cap - 16 * 1024 * 1024)
    limit = max(32 * 1024 * 1024, cap - 8 * 1024 * 1024)
    return budget, limit


def _logreg_kernel(x_ref, w_ref, b_ref, o_ref):
    # x_ref: (tile_n, ft_in), w_ref: (ft_in, ncls_pad), b_ref: (1, ncls_pad) f32
    acc = jnp.dot(x_ref[...], w_ref[...], preferred_element_type=jnp.float32)
    o_ref[...] = (acc + b_ref[...]).astype(o_ref.dtype)


def prepare_logreg_params(weight, bias, *, dtype=None, pad_classes=None):
    """One-time prep (do at init, not per forward call).

    Transposes W to (ft_in, nb_classes), optionally casts it (e.g. bfloat16 fast
    path), and zero-pads the class dim to a multiple of 128 for lane-dense output
    stores. Padding is skipped automatically for tiny ft_in/nb_classes where the
    padded writeback would dominate HBM traffic. Bias stays f32 so it adds onto
    the f32 MXU accumulator.
    """
    nb_classes, ft_in = weight.shape
    if dtype is None:
        dtype = weight.dtype
    if pad_classes is None:
        pad_classes = not (ft_in <= _LANE and nb_classes <= 32)
    ncls_pad = _round_up(nb_classes, _LANE) if pad_classes else nb_classes

    w_t = jnp.zeros((ft_in, ncls_pad), dtype=dtype)
    w_t = w_t.at[:, :nb_classes].set(weight.T.astype(dtype))
    b_pad = jnp.zeros((1, ncls_pad), dtype=jnp.float32)
    b_pad = b_pad.at[0, :nb_classes].set(bias.astype(jnp.float32))
    return w_t, b_pad, nb_classes


def _pick_tile_n(n_rows, ft_in, ncls_pad, x_itemsize, out_itemsize, w_itemsize,
                 budget):
    """Largest row tile (<=_TILE_CAP, multiple of sublane count) keeping
    double-buffered x/out tiles + single-buffered resident W/bias under budget."""
    sub = 8 if x_itemsize >= 4 else 16
    # W + bias are grid-invariant and single-buffered (pl.Buffered(1)): count once.
    w_bytes = ft_in * ncls_pad * w_itemsize + ncls_pad * 4
    per_row = 2 * ft_in * x_itemsize + 2 * ncls_pad * out_itemsize
    if w_bytes + sub * per_row > budget:
        # TODO(synk): add K (ft_in) / class grid axes with an f32 VMEM accumulator
        # (pl.when init/flush) so huge ft_in * nb_classes shapes fit in VMEM.
        raise ValueError(
            "LogReg weight block does not fit in VMEM; K/class tiling not "
            f"implemented (ft_in={ft_in}, padded classes={ncls_pad})."
        )
    max_rows = (budget - w_bytes) // per_row
    tile = min(_TILE_CAP, _round_up(n_rows, sub), max_rows)
    # Keep >=2 row tiles when there is enough work so the 'parallel' grid axis
    # actually gives both v7x TensorCores a share of the HBM stream.
    if n_rows > 2 * sub:
        tile = min(tile, _round_up(-(-n_rows // 2), sub))
    return max(sub, (tile // sub) * sub)


@functools.partial(jax.jit, static_argnames=("nb_classes",))
def logreg_forward(seq, w_t_pad, b_pad, nb_classes):
    """seq: (N, ft_in); w_t_pad/b_pad from prepare_logreg_params."""
    N, ft_in = seq.shape
    ncls_pad = w_t_pad.shape[1]
    out_dtype = seq.dtype

    # Align activation dtype with the (possibly bf16) weights -> native MXU path,
    # no per-tile promotion inside the kernel.
    x = seq if seq.dtype == w_t_pad.dtype else seq.astype(w_t_pad.dtype)

    budget, vmem_limit = _vmem_budget()
    tile_n = _pick_tile_n(
        N, ft_in, ncls_pad,
        x.dtype.itemsize, out_dtype.itemsize, w_t_pad.dtype.itemsize, budget,
    )
    grid_n = pl.cdiv(N, tile_n)   # ragged last tile handled by Pallas (masked)

    cost = pl.CostEstimate(
        flops=2 * N * ft_in * ncls_pad,
        transcendentals=0,
        bytes_accessed=(N * ft_in * x.dtype.itemsize
                        + N * ncls_pad * out_dtype.itemsize
                        + ft_in * ncls_pad * w_t_pad.dtype.itemsize
                        + ncls_pad * 4),
    )

    out = pl.pallas_call(
        _logreg_kernel,
        out_shape=jax.ShapeDtypeStruct((N, ncls_pad), out_dtype),
        grid=(grid_n,),
        in_specs=[
            # Stream x row-tiles (double-buffered by default).
            pl.BlockSpec((tile_n, ft_in), lambda i: (i, 0)),
            # W and bias never change across the grid: single-buffer them.
            pl.BlockSpec((ft_in, ncls_pad), lambda i: (0, 0),
                         pipeline_mode=pl.Buffered(1)),
            pl.BlockSpec((1, ncls_pad), lambda i: (0, 0),
                         pipeline_mode=pl.Buffered(1)),
        ],
        out_specs=pl.BlockSpec((tile_n, ncls_pad), lambda i: (i, 0)),
        compiler_params=pltpu.CompilerParams(
            dimension_semantics=("parallel",),   # lets v7x use both TensorCores
            vmem_limit_bytes=vmem_limit,
        ),
        cost_estimate=cost,
    )(x, w_t_pad, b_pad)

    return out[:, :nb_classes]


def init_logreg_params(key, ft_in, nb_classes, dtype=jnp.float32):
    """Deterministic init matching the module: xavier_uniform_ weight, zero bias."""
    limit = math.sqrt(6.0 / (ft_in + nb_classes))
    weight = jax.random.uniform(
        key, (nb_classes, ft_in), dtype=dtype, minval=-limit, maxval=limit
    )
    bias = jnp.zeros((nb_classes,), dtype=dtype)
    return weight, bias


if __name__ == "__main__":
    key = jax.random.PRNGKey(0)
    k_x, k_w = jax.random.split(key)

    N, ft_in, nb_classes = 8, 32, 16
    seq = jax.random.normal(k_x, (N, ft_in), dtype=jnp.float32)
    weight, bias = init_logreg_params(k_w, ft_in, nb_classes)

    # Reference (plain JAX) — same semantics as torch nn.Linear.
    ref = seq @ weight.T + bias

    # Default f32 path.
    w_t, b_p, ncls = prepare_logreg_params(weight, bias)
    out = jax.block_until_ready(logreg_forward(seq, w_t, b_p, ncls))
    assert out.shape == (N, nb_classes)
    assert jnp.allclose(out, ref, atol=1e-5, rtol=1e-5)

    # bf16 fast path (halves HBM read bytes; f32 accumulation + f32 bias add).
    w_t16, b_p16, _ = prepare_logreg_params(weight, bias, dtype=jnp.bfloat16)
    out16 = jax.block_until_ready(logreg_forward(seq, w_t16, b_p16, ncls))
    assert out16.shape == (N, nb_classes)
    assert jnp.allclose(out16.astype(jnp.float32), ref, atol=1e-1, rtol=1e-1)

    print("KERNEL_OK")
</pallas_src>

<mosaic_0001>
module attributes {stable_mosaic.version = 11 : i64} {
  func.func @_logreg_kernel(%arg0: i32, %arg1: memref<8x32xf32, #tpu.memory_space<vmem>>, %arg2: memref<32x16xf32, #tpu.memory_space<vmem>>, %arg3: memref<1x16xf32, #tpu.memory_space<vmem>>, %arg4: memref<8x16xf32, #tpu.memory_space<vmem>>) attributes {dimension_semantics = [#tpu.dimension_semantics<parallel>], iteration_bounds = array<i64: 1>, scalar_prefetch = 0 : i64, scratch_operands = 0 : i64, tpu.core_type = #tpu.core_type<tc>, window_params = [{transform_indices = @transform_0, window_bounds = array<i64: 8, 32>}, {pipeline_mode = #tpu.pipeline_mode<synchronous>, transform_indices = @transform_1, window_bounds = array<i64: 32, 16>}, {pipeline_mode = #tpu.pipeline_mode<synchronous>, transform_indices = @transform_2, window_bounds = array<i64: 1, 16>}, {transform_indices = @transform_3, window_bounds = array<i64: 8, 16>}]} {
    %c0 = arith.constant 0 : index
    %c0_0 = arith.constant 0 : index
    %0 = vector.load %arg1[%c0, %c0_0] : memref<8x32xf32, #tpu.memory_space<vmem>>, vector<8x32xf32>
    %c0_1 = arith.constant 0 : index
    %c0_2 = arith.constant 0 : index
    %1 = vector.load %arg2[%c0_1, %c0_2] : memref<32x16xf32, #tpu.memory_space<vmem>>, vector<32x16xf32>
    %cst = arith.constant dense<0.000000e+00> : vector<8x16xf32>
    %2 = tpu.matmul %0, %1, %cst {dimension_numbers = #tpu.dot_dimension_numbers<[1], [0], [0], [1], [0, 0, 1, 1], [], []>} : vector<8x32xf32>, vector<32x16xf32>, vector<8x16xf32> -> vector<8x16xf32>
    %c0_3 = arith.constant 0 : index
    %c0_4 = arith.constant 0 : index
    %3 = vector.load %arg3[%c0_3, %c0_4] : memref<1x16xf32, #tpu.memory_space<vmem>>, vector<1x16xf32>
    %4 = vector.broadcast %3 : vector<1x16xf32> to vector<8x16xf32>
    %5 = arith.addf %2, %4 : vector<8x16xf32>
    %c0_5 = arith.constant 0 : index
    %c0_6 = arith.constant 0 : index
    %6 = vector.load %arg4[%c0_5, %c0_6] : memref<8x16xf32, #tpu.memory_space<vmem>>, vector<8x16xf32>
    tpu.vector_store %arg4[%c0_5, %c0_6], %5 {strides = array<i32>} : memref<8x16xf32, #tpu.memory_space<vmem>>, vector<8x16xf32>,
    return
  }
  func.func @transform_0(%arg0: i32) -> (i32, i32) {
    %c0_i32 = arith.constant 0 : i32
    %c0_i32_0 = arith.constant 0 : i32
    return %arg0, %c0_i32 : i32, i32
  }
  func.func @transform_1(%arg0: i32) -> (i32, i32) {
    %c0_i32 = arith.constant 0 : i32
    %c0_i32_0 = arith.constant 0 : i32
    %c0_i32_1 = arith.constant 0 : i32
    return %c0_i32, %c0_i32_0 : i32, i32
  }
  func.func @transform_2(%arg0: i32) -> (i32, i32) {
    %c0_i32 = arith.constant 0 : i32
    %c0_i32_0 = arith.constant 0 : i32
    %c0_i32_1 = arith.constant 0 : i32
    return %c0_i32, %c0_i32_0 : i32, i32
  }
  func.func @transform_3(%arg0: i32) -> (i32, i32) {
    %c0_i32 = arith.constant 0 : i32
    %c0_i32_0 = arith.constant 0 : i32
    return %arg0, %c0_i32 : i32, i32
  }
}

</mosaic_0001>

<bundles_post_ra>
// kernel: logreg_forward.1
= control target key start
LH: loop header
LB: loop body
LE: loop exit
PB: predicated region body
PF: predicated region fallthrough
CT: control target
= control target key end

     0   :  { %v169_v3 = vmov 0.0|0.0   ;;  %vm170_vm0 = vmmov 0   ;;  %v171_v6 = vmov 0.0   ;;  %s223_s0 = inlined_call_operand.vmem [shape: f32[8,32], index: 0, kind: input, shape index: {}]   ;;  %s224_s1 = inlined_call_operand.vmem [shape: f32[32,16], index: 1, kind: input, shape index: {}]   ;;  %s225_s2 = inlined_call_operand.vmem [shape: f32[1,16], index: 2, kind: input, shape index: {}]   ;;  %s226_s3 = inlined_call_operand.hbm [shape: f32[8,16], index: 3, kind: output, shape index: {}]  }
   0x1   :  { %v16_v0 = vld [vmem:[%s224_s1] sm:$0xff]  ;;  %v17_v1 = vld [vmem:[%s224_s1 + $0x8] sm:$0xff]  ;;  %v18_v2 = vld [vmem:[%s224_s1 + $0x10] sm:$0xff]  ;;  %135 = vmatprep.subr.bf16.mxu0 %v169_v3  ;;  %132 = vmatprep.mubr.msk.f32.mxu0 %vm170_vm0, %v171_v6 }
   0x2   :  { %v136_v4 = vpack.c.bf16 %v17_v1, %v16_v0  ;;  %v19_v5 = vld [vmem:[%s224_s1 + $0x18] sm:$0xff] }
   0x3   :  { %8 = vsyncpa [#allocation3], 0  ;;  %v139_v7 = vpack.c.bf16 %v19_v5, %v18_v2  ;;  %v15_v8 = vld [vmem:[%s223_s0] sm:$0xff]  ;;  %vm27_vm1 = vcmask 261120   ;;  %s172_s24 = smov [#allocation2]   ;;  %vm101_vm2 = vcmask 130048  }
   0x4   :  { %137 = vmatpush3.bf16.msra.mxu0 %v136_v4  ;;  %v117_v9 = vld [vmem:[%s225_s2] ss:$0 sm:$0xff]  ;;  %s109_s1 = sshll.u32 %s172_s24, 4  ;;  %s110_s1 = int_to_ptr.vmem [resolvable:$true] %s109_s1 }
   0x5   :  { %138 = vmatprep.subr.bf16.mxu0 %v169_v3  ;;  %s145_s25 = scalar_lea.vmem %s110_s1, 128  ;;  %p150_p1 = scmp.lt.s32.totalorder %s110_s1, %s110_s1 }
   0x6   :  { %p146_p0 = scmp.ne.s32.totalorder %s110_s1, %s145_s25  ;;  %p151_p2 = scmp.lt.s32.totalorder %s145_s25, %s145_s25 }
   0x8   :  { %140 = vmatpush3.bf16.msra.mxu0 %v139_v7  ;;  %p152_p3 = por %p151_p2, %p150_p1 }
   0xa   :  { %p153_p4 = pnand %p152_p3, %p146_p0 }
   0xb   :  { %133 = vmatmul.mubr.msk.f32.vlgmr.msra.gmra.mrb[0].mxu0 %vm27_vm1, %v15_v8 }
  0xde   :  { %v97_v10 = vpop.f32.mrb[0].mxu0 }
  0xdf   :  { %v98_v11 = vadd.f32 %v117_v9, %v97_v10  ;;  %v134_v12 = vpop.f32.mrb[1].mxu0 }
  0xe1   :  { %102 = vst.msk [vmem:[#allocation2] sm:$0xff] %vm101_vm2, %v98_v11 }
  0xe2   :  { %156 = shalt.err (!%p153_p4)
}
  0xe3   :  { %s157_s27 = scalar_lea.hbm %s226_s3, 128 }
  0xe4   :  { %p158_p5 = scmp.ne.s32.totalorder %s226_s3, %s157_s27  ;;  %p161_p6 = scmp.lt.u32.totalorder %s157_s27, %s226_s3 }
  0xe6   :  { %p163_p7 = pnand %p161_p6, %p158_p5 }
  0xe8   :  { %166 = shalt.err (!%p163_p7)
}
  0xe9   :  { %112 = dma.vmem_to_hbm [thread:$0]  %s110_s1, 128, %s226_s3, [#allocation3]  }
  0xea   :  { %167 = dma.done.wait [#allocation3], 128  }
  0xeb   :  { %168 = vsyncadd [#allocation3], 4294967168 }
  0xec   :  { %116 = vsyncpa [#allocation3], 1 }

</bundles_post_ra>
